<compile_context>
chip_gen: v5e
topology: v5e:2x2
jax: 0.10.0
libtpu: 0.0.40
codegen_flags: <defaults>
</compile_context>

<pallas_src>
import jax
import jax.numpy as jnp
from jax import lax
from jax.experimental import pallas as pl
from jax.experimental.pallas import tpu as pltpu


_MXU_CHANNEL_THRESHOLD = 512  # below this, excitation stays on the VPU


def _vmem_capacity_bytes(default=64 << 20):
    """Physical VMEM of the current chip (conservative 64 MiB fallback)."""
    try:
        info = pltpu.get_tpu_info()
        cap = getattr(info, "vmem_capacity_bytes", None)
        if cap:
            return int(cap)
    except Exception:
        pass
    return default


def _vmem_limit(est_bytes, vmem_cap):
    # Leave headroom; cap scoped VMEM at ~75% of physical so double-buffering
    # and compiler scratch still fit (matters on v7x's 64 MiB).
    return int(min(int(0.75 * vmem_cap), max(32 << 20, est_bytes + (4 << 20))))


def _choose_batch_block(B, per_batch_block_bytes, target_block_bytes):
    """Largest divisor of B whose (in+out) block stays near the ~1-4 MiB
    sweet spot while keeping enough grid steps (>=4 preferred, even step
    count preferred so both v7x TensorCores get pipelined work)."""
    divisors = [d for d in range(1, B + 1) if B % d == 0]
    for min_steps, want_even in ((4, True), (4, False), (2, True), (2, False), (1, False)):
        cands = []
        for d in divisors:
            steps = B // d
            if d > 1 and d * per_batch_block_bytes > target_block_bytes:
                continue
            if steps < min(min_steps, B):
                continue
            if want_even and B >= 2 and steps % 2 != 0:
                continue
            cands.append(d)
        if cands:
            return max(cands)
    return 1


def _excite(pooled, w1_ref, w2t_ref, use_mxu):
    """pooled (Bb, C) f32 -> sigmoid channel gate (Bb, C) f32."""
    w1 = w1_ref[...].astype(jnp.float32)     # (C_red, C)
    w2t = w2t_ref[...].astype(jnp.float32)   # (C_red, C)
    if use_mxu:
        # Large C: MXU dots avoid the (Bb, C_red, C) f32 broadcast temp.
        h = lax.dot_general(pooled, w1, (((1,), (1,)), ((), ())),
                            preferred_element_type=jnp.float32)
        h = jnp.maximum(h, 0.0)
        z = lax.dot_general(h, w2t, (((1,), (0,)), ((), ())),
                            preferred_element_type=jnp.float32)
    else:
        # Small C: broadcast-multiply + reduce on the VPU/XLU (tiny shapes,
        # keeps MXU push/drain latency off the critical path).
        h = jnp.sum(pooled[:, None, :] * w1[None, :, :], axis=-1)
        h = jnp.maximum(h, 0.0)
        z = jnp.sum(h[:, :, None] * w2t[None, :, :], axis=1)
    return jax.nn.sigmoid(z)


# ----------------------------- single-pass path -----------------------------

def _make_single_pass_kernel(inv_spatial, use_mxu):
    def kernel(x_ref, w1_ref, w2t_ref, o_ref):
        # Squeeze: f32-accumulated mean over spatial dims (no full-block cast).
        pooled = jnp.sum(x_ref[...], axis=-1, dtype=jnp.float32) * inv_spatial  # (Bb, C)
        g = _excite(pooled, w1_ref, w2t_ref, use_mxu)                           # (Bb, C)
        # Scale: multiply the raw block by the gate cast to the input dtype.
        o_ref[...] = (x_ref[...] * g[:, :, None].astype(x_ref.dtype)).astype(o_ref.dtype)
    return kernel


# ------------------------------ two-phase path -------------------------------

def _make_pool_gate_kernel(S, s_tile, inv_spatial, use_mxu):
    needs_mask = (S % s_tile) != 0

    def kernel(x_ref, w1_ref, w2t_ref, gate_ref, acc_ref):
        si = pl.program_id(1)

        @pl.when(si == 0)
        def _():
            acc_ref[...] = jnp.zeros_like(acc_ref)

        x_blk = x_ref[...]                                     # (1, C, s_tile)
        if needs_mask:
            # Last spatial tile may overrun S: mask the out-of-bounds lanes.
            col = lax.broadcasted_iota(jnp.int32, x_blk.shape, 2) + si * s_tile
            x_blk = jnp.where(col < S, x_blk, jnp.zeros_like(x_blk))
        acc_ref[...] += jnp.sum(x_blk, axis=-1, dtype=jnp.float32)   # (1, C)

        @pl.when(si == pl.num_programs(1) - 1)
        def _():
            pooled = acc_ref[...] * inv_spatial                # (1, C) f32
            g = _excite(pooled, w1_ref, w2t_ref, use_mxu)      # (1, C) f32
            gate_ref[...] = g[:, None, :]                      # (1, 1, C)

    return kernel


def _scale_kernel(gate_ref, x_ref, o_ref):
    g = gate_ref[...][:, 0, :]                                 # (1, C) f32
    o_ref[...] = (x_ref[...] * g[:, :, None].astype(x_ref.dtype)).astype(o_ref.dtype)


# --------------------------------- wrapper -----------------------------------

def se_layer(x, w1, w2, *, out_dtype=None, target_block_bytes=2 << 20,
             two_phase_threshold_bytes=None, force_two_phase=False):
    """Squeeze-and-excitation over a (B, C, D, H, W) input.

    w1: (C//r, C), w2: (C, C//r) -- PyTorch nn.Linear weights, no bias.
    out_dtype defaults to x.dtype; passing jnp.bfloat16 for f32 inputs halves
    writeback traffic (~25% less HBM traffic on this 1-read/1-write op --
    strongly recommended on v5e) at the cost of bf16 output precision.
    """
    B, C, D, H, W = x.shape
    C_red = w1.shape[0]
    assert w1.shape == (C_red, C) and w2.shape == (C, C_red)
    out_dtype = x.dtype if out_dtype is None else jnp.dtype(out_dtype)

    S = D * H * W
    x2 = x.reshape(B, C, S)              # contiguous view; no pad, no copy
    w2t = w2.T                           # (C_red, C), tiny

    x_b = x.dtype.itemsize
    o_b = out_dtype.itemsize
    per_batch_block = C * S * (x_b + o_b)          # one in-block + one out-block
    weight_bytes = 2 * 2 * C_red * C * 4           # two weights, double-buffered

    vmem_cap = _vmem_capacity_bytes()
    if two_phase_threshold_bytes is None:
        two_phase_threshold_bytes = min(16 << 20, vmem_cap // 4)
    use_mxu = C >= _MXU_CHANNEL_THRESHOLD
    inv_spatial = 1.0 / float(S)

    use_two_phase = force_two_phase or per_batch_block > two_phase_threshold_bytes

    if not use_two_phase:
        # ---- single pass: x is read once and written once -------------------
        Bb = _choose_batch_block(B, per_batch_block, target_block_bytes)
        grid_b = B // Bb
        excite_tmp = 0 if use_mxu else Bb * C_red * C * 4
        est = 2 * Bb * per_batch_block + weight_bytes + excite_tmp
        # NOTE: pipeline_mode=pl.Buffered(3) on the x/output specs is a cheap
        # extra knob to sweep once blocks are this small; default 2 buffers
        # kept here for robustness.
        out = pl.pallas_call(
            _make_single_pass_kernel(inv_spatial, use_mxu),
            out_shape=jax.ShapeDtypeStruct((B, C, S), out_dtype),
            grid_spec=pltpu.PrefetchScalarGridSpec(
                num_scalar_prefetch=0,
                grid=(grid_b,),
                in_specs=[
                    pl.BlockSpec((Bb, C, S), lambda b: (b, 0, 0)),
                    pl.BlockSpec((C_red, C), lambda b: (0, 0)),
                    pl.BlockSpec((C_red, C), lambda b: (0, 0)),
                ],
                out_specs=pl.BlockSpec((Bb, C, S), lambda b: (b, 0, 0)),
            ),
            compiler_params=pltpu.CompilerParams(
                dimension_semantics=("parallel",),
                vmem_limit_bytes=_vmem_limit(est, vmem_cap),
            ),
        )(x2, w1, w2t)
        return out.reshape(B, C, D, H, W)

    # ---- two-phase: streaming pool/gate pass + spatially tiled scale pass ---
    per_lane_bytes = C * (x_b + o_b)
    st = max(128, (target_block_bytes // max(per_lane_bytes, 1)) // 128 * 128)
    if st >= S:
        s_tile, num_s = S, 1
    else:
        s_tile, num_s = st, -(-S // st)

    est1 = 2 * C * s_tile * x_b + weight_bytes + 4 * C * 4
    gate = pl.pallas_call(
        _make_pool_gate_kernel(S, s_tile, inv_spatial, use_mxu),
        out_shape=jax.ShapeDtypeStruct((B, 1, C), jnp.float32),
        grid_spec=pltpu.PrefetchScalarGridSpec(
            num_scalar_prefetch=0,
            grid=(B, num_s),
            in_specs=[
                pl.BlockSpec((1, C, s_tile), lambda b, s: (b, 0, s)),
                pl.BlockSpec((C_red, C), lambda b, s: (0, 0)),
                pl.BlockSpec((C_red, C), lambda b, s: (0, 0)),
            ],
            out_specs=pl.BlockSpec((1, 1, C), lambda b, s: (b, 0, 0)),
            scratch_shapes=[pltpu.VMEM((1, C), jnp.float32)],
        ),
        compiler_params=pltpu.CompilerParams(
            dimension_semantics=("parallel", "arbitrary"),
            vmem_limit_bytes=_vmem_limit(est1, vmem_cap),
        ),
    )(x2, w1, w2t)

    est2 = 2 * C * s_tile * (x_b + o_b) + 4 * C * 4
    out = pl.pallas_call(
        _scale_kernel,
        out_shape=jax.ShapeDtypeStruct((B, C, S), out_dtype),
        grid_spec=pltpu.PrefetchScalarGridSpec(
            num_scalar_prefetch=0,
            grid=(B, num_s),
            in_specs=[
                pl.BlockSpec((1, 1, C), lambda b, s: (b, 0, 0)),
                pl.BlockSpec((1, C, s_tile), lambda b, s: (b, 0, s)),
            ],
            out_specs=pl.BlockSpec((1, C, s_tile), lambda b, s: (b, 0, s)),
        ),
        compiler_params=pltpu.CompilerParams(
            dimension_semantics=("parallel", "parallel"),
            vmem_limit_bytes=_vmem_limit(est2, vmem_cap),
        ),
    )(gate, x2)
    return out.reshape(B, C, D, H, W)


# -------------------------------- reference ----------------------------------

def se_layer_ref(x, w1, w2):
    """Pure-JAX reference mirroring the PyTorch forward."""
    B, C = x.shape[:2]
    y = jnp.mean(x, axis=(2, 3, 4))                 # AdaptiveAvgPool3d(1) + view
    y = jnp.maximum(y @ w1.T, 0.0)                  # Linear(C, C//r) + ReLU
    y = jax.nn.sigmoid(y @ w2.T)                    # Linear(C//r, C) + Sigmoid
    return x * y.reshape(B, C, 1, 1, 1)


def _run_case(key, B, C, D, H, W, reduction, **kw):
    kx, k1, k2 = jax.random.split(key, 3)
    C_red = max(1, C // reduction)
    x = jax.random.normal(kx, (B, C, D, H, W), dtype=jnp.float32)
    w1 = jax.random.normal(k1, (C_red, C), dtype=jnp.float32) * 0.1
    w2 = jax.random.normal(k2, (C, C_red), dtype=jnp.float32) * 0.1

    out = jax.block_until_ready(se_layer(x, w1, w2, **kw))
    ref = se_layer_ref(x, w1, w2)
    assert out.shape == (B, C, D, H, W)
    err = jnp.max(jnp.abs(out - ref))
    assert jnp.allclose(out, ref, atol=1e-4, rtol=1e-4), f"max abs err {err}"


if __name__ == "__main__":
    key = jax.random.PRNGKey(0)
    k_a, k_b, k_c, k_d = jax.random.split(key, 4)

    # 1) Single pass, lane-aligned spatial (S=256), C=64, r=16 -> hidden 4.
    _run_case(k_a, B=2, C=64, D=4, H=8, W=8, reduction=16)

    # 2) Single pass, unaligned S=105 and unaligned lane stores (no wrapper
    #    padding anymore) -- guards the masked full-dim-block reduce/store.
    _run_case(k_b, B=4, C=32, D=3, H=5, W=7, reduction=16)

    # 3) Two-phase path (forced, with small S tiles so the masked partial
    #    last spatial tile is exercised: S=300 -> tiles of 128).
    _run_case(k_c, B=2, C=32, D=3, H=10, W=10, reduction=16,
              force_two_phase=True, target_block_bytes=32 * 1024)

    # 4) Large channel count -> MXU excitation path (C=512, hidden 32).
    _run_case(k_d, B=2, C=512, D=2, H=4, W=8, reduction=16)

    print("KERNEL_OK")
</pallas_src>

<mosaic_0001>
module attributes {stable_mosaic.version = 11 : i64} {
  func.func @kernel(%arg0: i32, %arg1: memref<1x64x256xf32, #tpu.memory_space<vmem>>, %arg2: memref<4x64xf32, #tpu.memory_space<vmem>>, %arg3: memref<4x64xf32, #tpu.memory_space<vmem>>, %arg4: memref<1x64x256xf32, #tpu.memory_space<vmem>>) attributes {dimension_semantics = [#tpu.dimension_semantics<parallel>], iteration_bounds = array<i64: 2>, scalar_prefetch = 0 : i64, scratch_operands = 0 : i64, tpu.core_type = #tpu.core_type<tc>, window_params = [{transform_indices = @transform_0, window_bounds = array<i64: 1, 64, 256>}, {pipeline_mode = #tpu.pipeline_mode<synchronous>, transform_indices = @transform_1, window_bounds = array<i64: 4, 64>}, {pipeline_mode = #tpu.pipeline_mode<synchronous>, transform_indices = @transform_2, window_bounds = array<i64: 4, 64>}, {transform_indices = @transform_3, window_bounds = array<i64: 1, 64, 256>}]} {
    %c0 = arith.constant 0 : index
    %c0_0 = arith.constant 0 : index
    %c0_1 = arith.constant 0 : index
    %0 = vector.load %arg1[%c0, %c0_0, %c0_1] : memref<1x64x256xf32, #tpu.memory_space<vmem>>, vector<1x64x256xf32>
    %cst = arith.constant dense<0.000000e+00> : vector<1x64xf32>
    %1 = vector.multi_reduction <add>, %0, %cst [2] : vector<1x64x256xf32> to vector<1x64xf32>
    %cst_2 = arith.constant 3.906250e-03 : f32
    %2 = vector.broadcast %cst_2 : f32 to vector<1x64xf32>
    %3 = arith.mulf %1, %2 : vector<1x64xf32>
    %c0_3 = arith.constant 0 : index
    %c0_4 = arith.constant 0 : index
    %4 = vector.load %arg2[%c0_3, %c0_4] : memref<4x64xf32, #tpu.memory_space<vmem>>, vector<4x64xf32>
    %c0_5 = arith.constant 0 : index
    %c0_6 = arith.constant 0 : index
    %5 = vector.load %arg3[%c0_5, %c0_6] : memref<4x64xf32, #tpu.memory_space<vmem>>, vector<4x64xf32>
    %6 = vector.shape_cast %3 : vector<1x64xf32> to vector<1x1x64xf32>
    %7 = vector.shape_cast %4 : vector<4x64xf32> to vector<1x4x64xf32>
    %8 = vector.broadcast %6 : vector<1x1x64xf32> to vector<1x4x64xf32>
    %9 = arith.mulf %8, %7 : vector<1x4x64xf32>
    %cst_7 = arith.constant dense<0.000000e+00> : vector<1x4xf32>
    %10 = vector.multi_reduction <add>, %9, %cst_7 [2] : vector<1x4x64xf32> to vector<1x4xf32>
    %cst_8 = arith.constant 0.000000e+00 : f32
    %11 = vector.broadcast %cst_8 : f32 to vector<1x4xf32>
    %12 = arith.maximumf %10, %11 : vector<1x4xf32>
    %13 = vector.shape_cast %12 : vector<1x4xf32> to vector<1x4x1xf32>
    %14 = vector.shape_cast %5 : vector<4x64xf32> to vector<1x4x64xf32>
    %15 = vector.broadcast %13 : vector<1x4x1xf32> to vector<1x4x64xf32>
    %16 = arith.mulf %15, %14 : vector<1x4x64xf32>
    %cst_9 = arith.constant dense<0.000000e+00> : vector<1x64xf32>
    %17 = vector.multi_reduction <add>, %16, %cst_9 [1] : vector<1x4x64xf32> to vector<1x64xf32>
    %18 = arith.negf %17 : vector<1x64xf32>
    %19 = math.exp %18 : vector<1x64xf32>
    %cst_10 = arith.constant 1.000000e+00 : f32
    %20 = vector.broadcast %cst_10 : f32 to vector<1x64xf32>
    %21 = arith.addf %20, %19 : vector<1x64xf32>
    %22 = arith.divf %20, %21 : vector<1x64xf32>
    %c0_11 = arith.constant 0 : index
    %c0_12 = arith.constant 0 : index
    %c0_13 = arith.constant 0 : index
    %23 = vector.load %arg1[%c0_11, %c0_12, %c0_13] : memref<1x64x256xf32, #tpu.memory_space<vmem>>, vector<1x64x256xf32>
    %24 = vector.shape_cast %22 : vector<1x64xf32> to vector<1x64x1xf32>
    %25 = vector.broadcast %24 : vector<1x64x1xf32> to vector<1x64x256xf32>
    %26 = arith.mulf %23, %25 : vector<1x64x256xf32>
    %c0_14 = arith.constant 0 : index
    %c0_15 = arith.constant 0 : index
    %c0_16 = arith.constant 0 : index
    %27 = vector.load %arg4[%c0_14, %c0_15, %c0_16] : memref<1x64x256xf32, #tpu.memory_space<vmem>>, vector<1x64x256xf32>
    tpu.vector_store %arg4[%c0_14, %c0_15, %c0_16], %26 {strides = array<i32>} : memref<1x64x256xf32, #tpu.memory_space<vmem>>, vector<1x64x256xf32>,
    return
  }
  func.func @transform_0(%arg0: i32) -> (i32, i32, i32) {
    %c0_i32 = arith.constant 0 : i32
    %c0_i32_0 = arith.constant 0 : i32
    %c0_i32_1 = arith.constant 0 : i32
    return %arg0, %c0_i32, %c0_i32_0 : i32, i32, i32
  }
  func.func @transform_1(%arg0: i32) -> (i32, i32) {
    %c0_i32 = arith.constant 0 : i32
    %c0_i32_0 = arith.constant 0 : i32
    %c0_i32_1 = arith.constant 0 : i32
    return %c0_i32, %c0_i32_0 : i32, i32
  }
  func.func @transform_2(%arg0: i32) -> (i32, i32) {
    %c0_i32 = arith.constant 0 : i32
    %c0_i32_0 = arith.constant 0 : i32
    %c0_i32_1 = arith.constant 0 : i32
    return %c0_i32, %c0_i32_0 : i32, i32
  }
  func.func @transform_3(%arg0: i32) -> (i32, i32, i32) {
    %c0_i32 = arith.constant 0 : i32
    %c0_i32_0 = arith.constant 0 : i32
    %c0_i32_1 = arith.constant 0 : i32
    return %arg0, %c0_i32, %c0_i32_0 : i32, i32, i32
  }
}

</mosaic_0001>

<bundles_post_ra>
// kernel: tpu_custom_call.1
= control target key start
LH: loop header
LB: loop body
LE: loop exit
PB: predicated region body
PF: predicated region fallthrough
CT: control target
= control target key end

     0   :  { %8 = vsyncpa [#allocation3], 0  ;;  %s1722_s0 = inlined_call_operand.hbm [shape: f32[2,64,256], index: 0, kind: input, shape index: {}]   ;;  %s1723_s1 = inlined_call_operand.hbm [shape: f32[4,64], index: 1, kind: input, shape index: {}]   ;;  %s1724_s2 = inlined_call_operand.hbm [shape: f32[4,64], index: 2, kind: input, shape index: {}]   ;;  %s1725_s3 = inlined_call_operand.hbm [shape: f32[2,64,256], index: 3, kind: output, shape index: {}]  }
   0x1   :  { %10 = vsyncpa [#allocation3 + $0x1], 0 }
   0x2   :  { %11 = vsyncpa [#allocation6], 0 }
   0x3   :  { %12 = vsyncpa [#allocation4], 0 }
   0x4   :  { %14 = vsyncpa [#allocation4 + $0x1], 0  ;;  %s1292_s12 = smov 0   ;;  %s1294_s13 = smov 0  }
   0x5   :  { %s1296_s14 = smov 0   ;;  %s1298_s15 = smov 0  }
   0x6 LB: > { %s1313_s16 = sadd.s32 4294967295, %s1263_s15   ;;  %s962_s17 = sadd.s32 4294967294, %s1263_s15   ;;  %s1263_s15 = sphi %s1298_s15, %s1736_s15   ;;  %s1259_s14 = sphi %s1296_s14, %s1735_s14   ;;  %s1255_s13 = sphi %s1294_s13, %s1734_s13   ;;  %s1251_s12 = sphi %s1292_s12, %s1733_s12  }
   0x7   : > { %s1317_s18 = sadd.s32 1, %s1263_s15   ;;  %s27_s19 = sadd.s32 1, %s1259_s14 }
   0x8   : > { %s24_s20 = ssub.s32 %s1263_s15, %s1317_s18  ;;  %p34_p0 = scmp.ne.s32.totalorder %s1259_s14, %s1255_s13 }
   0x9   : > { %p25_p1 = scmp.eq.s32.totalorder %s24_s20, 0  ;;  %p35_p2 = scmp.eq.s32.totalorder %s1263_s15, 0 }
   0xa   : > { %p40_p3 = scmp.ne.s32.totalorder %s1255_s13, %s1251_s12  ;;  %p41_p4 = scmp.eq.s32.totalorder %s1313_s16, 0 }
   0xb   : > { %s1329_s21 = scalar_select %p25_p1, %s1259_s14, %s27_s19  }
   0xc   : > { %p1331_p5 = por %p35_p2, %p34_p0  ;;  %p1337_p6 = por %p41_p4, %p40_p3 }
   0xd   : > { %p106_p7 = scmp.eq.s32.totalorder %s1313_s16, 1  ;;  %p112_p8 = scmp.eq.s32.totalorder %s962_s17, 1 }
   0xe   : > { %p963_p9 = scmp.ge.s32.totalorder %s1263_s15, 1  ;;  %p119_p10 = scmp.lt.s32.totalorder %s1263_s15, 3 }
   0xf   : > { %p1344_p11 = por %p106_p7, %p34_p0  ;;  %p1348_p12 = por %p112_p8, %p40_p3 }
  0x10   : > { %p1352_p13 = pnand %p963_p9, %p119_p10  ;;  %s131_s29 = sshll.u32 %s1723_s1, 4  ;;  %s132_s29 = int_to_ptr.hbm [resolvable:$true] %s131_s29 }
  0x11   : > { %s1265_s30 = smov [#allocation5]   ;;  %p1012_p3 = scmp.lt.s32.totalorder %s1263_s15, 2 }
  0x12   : > { %p995_p1 = pneg %p1352_p13  ;;  %s133_s4 = sshll.u32 %s1265_s30, 4  ;;  %s134_s4 = int_to_ptr.vmem [resolvable:$true] %s133_s4 }
  0x13   : > { %s143_s7 = sshll.u32 %s1724_s2, 4  ;;  %p1370_p7 = pnand %p1012_p3, %p1331_p5  ;;  %s144_s7 = int_to_ptr.hbm [resolvable:$true] %s143_s7 }
  0x14   : > { %p996_p2 = pnand %p995_p1, %p41_p4  ;;  %s1266_s9 = smov [#allocation7]  }
  0x15   : > { %s145_s10 = sshll.u32 %s1266_s9, 4  ;;  %s156_s11 = sand.u32 1, %s1259_s14   ;;  %s146_s10 = int_to_ptr.vmem [resolvable:$true] %s145_s10 }
  0x16   : > { %998 = dma.hbm_to_vmem [thread:$0]  (!%p996_p2), %s132_s29, 64, %s134_s4, [#allocation6]  }
  0x17   : > { %1001 = dma.hbm_to_vmem [thread:$0]  (!%p996_p2), %s144_s7, 64, %s146_s10, [#allocation6]  }
  0x18   : > { %s967_s17 = sshll.u32 %s156_s11, 7  ;;  %s981_s19 = sshll.u32 %s1263_s15, 7 }
  0x19   : > { %s165_s28 = scalar_lea.hbm %s1722_s0, %s981_s19  ;;  %s160_s30 = scalar_lea.vmem [#allocation2], %s967_s17 }
  0x1a   : > { %s168_s5 = sshll.u32 %s160_s30, 4  ;;  %s166_s29 = sshll.u32 %s165_s28, 4  ;;  %s169_s5 = int_to_ptr.vmem [resolvable:$true] %s168_s5  ;;  %s167_s29 = int_to_ptr.hbm [resolvable:$true] %s166_s29 }
  0x1b   : > { %s157_s22 = scalar_lea.sflag [#allocation3], %s156_s11  ;;  %s1163_s4 = sshra.s32 %s167_s29, 4  ;;  %s1164_s4 = int_to_ptr.hbm [resolvable:$true] %s1163_s4 }
  0x1c   : > { %s1165_s6 = scalar_lea.hbm %s1164_s4, 128  ;;  %p1167_p8 = pneg %p1370_p7 }
  0x1d   : > { %p1166_p5 = scmp.ne.s32.totalorder %s1164_s4, %s1165_s6  ;;  %s1170_s10 = scalar_lea.hbm %s1722_s0, 256 }
  0x1e   : > { %p1171_p1 = scmp.lt.s32.totalorder %s1164_s4, %s1722_s0  ;;  %p1172_p2 = scmp.lt.s32.totalorder %s1170_s10, %s1165_s6 }
  0x1f   : > { %p1168_p9 = pnand %p1167_p8, %p1166_p5 }
  0x20   : > { %p1173_p3 = por %p1172_p2, %p1171_p1 }
  0x21   : > { %p1169_p10 = pneg %p1168_p9 }
  0x23   : > { %p1174_p0 = pnand %p1173_p3, %p1169_p10 }
  0x25   : > { %1177 = shalt.err (!%p1174_p0)
}
  0x26   : > { %s1267_s11 = smov 256   ;;  %s1268_s17 = smov 16  }
  0x27   : > { %1005 = dma.hbm_to_vmem [thread:$0]  (!%p1370_p7), %s167_s29, 2048, %s169_s5, %s157_s22, %s1267_s11, %s1267_s11, %s1268_s17  }
  0x28   : > { %180 = sbr.rel (%p1352_p13) target bundleno = 830 (0x33e), region = 32  ;;  %s1392_s27 = sand.u32 (!%p1352_p13), 1, %s1255_s13  }
  0x29   : > { %s971_s28 = sshll.u32 (!%p1352_p13), %s1392_s27, 7  ;;  %s183_s30 = scalar_lea.sflag (!%p1352_p13), [#allocation3], %s1392_s27 }
  0x2a   : > { %s1398_s4 = scalar_lea.vmem (!%p1352_p13), [#allocation2], %s971_s28 }
  0x2d   : > { %1238 = dma.done.wait (%p1337_p6), %s183_s30, 2048  }
  0x2e   : > { %1240 = vsyncadd (%p1337_p6), %s183_s30, 4294965248 }
  0x2f   : > { %1242 = dma.done.wait (%p41_p4), [#allocation6], 128  }
  0x30   : > { %1244 = vsyncadd (%p41_p4), [#allocation6], 4294967168  ;;  %v272_v0 = vlaneseq  ;;  %v1417_v3 = vld [vmem:[%s1398_s4 + $0x40] sm:$0xff]  ;;  %v1420_v4 = vld [vmem:[%s1398_s4 + $0x48] sm:$0xff]  ;;  %v1269_v46 = vmov 0   ;;  %vm664_vm0 = vcmask 130112  }
  0x31   : > { %v1423_v5 = vld [vmem:[%s1398_s4 + $0x20] sm:$0xff]  ;;  %v248_v6 = vadd.f32 %v1420_v4, %v1417_v3  ;;  %v1428_v7 = vld [vmem:[%s1398_s4 + $0x28] sm:$0xff]  ;;  %v1444_v13 = vld [vmem:[%s1398_s4 + $0x50] sm:$0xff]  ;;  %vm668_vm1 = vcmask 195712   ;;  %vm672_vm2 = vcmask 261312   ;;  %vm676_vm3 = vcmask 326912  }
  0x32   : > { %v1409_v1 = vshrl.u32 %v272_v0, 7  ;;  %v1431_v8 = vld [vmem:[%s1398_s4] sm:$0xff]  ;;  %v1434_v9 = vld [vmem:[%s1398_s4 + $0x8] sm:$0xff]  ;;  %v242_v10 = vadd.f32 %v1428_v7, %v1423_v5  ;;  %v1447_v14 = vld [vmem:[%s1398_s4 + $0x58] sm:$0xff]  ;;  %vm680_vm4 = vcmask 392512   ;;  %vm684_vm5 = vcmask 458112  }
  0x33   : > { %v236_v11 = vadd.f32 %v1434_v9, %v1431_v8  ;;  %249 = vadd.xlane.f32.xlu2 %v248_v6  ;;  %v1450_v15 = vld [vmem:[%s1398_s4 + $0x30] sm:$0xff]  ;;  %v1453_v16 = vld [vmem:[%s1398_s4 + $0x38] sm:$0xff]  ;;  %v251_v19 = vadd.f32 %v1447_v14, %v1444_v13  ;;  %v1475_v24 = vld [vmem:[%s1398_s4 + $0x60] sm:$0xff]  ;;  %vm688_vm6 = vcmask 523712   ;;  %vm735_vm7 = vcmask 1041409   ;;  %s1656_s23 = scalar_lea.vmem [#allocation8], %s971_s28 }
  0x34   : > { %1055 = vset.pattern.permute.xlu2 %v1409_v1  ;;  %v1413_v2 = vadd.s32 8, %v1409_v1  ;;  %v1441_v12 = vadd.s32 16, %v1409_v1  ;;  %243 = vadd.xlane.f32.xlu1 %v242_v10  ;;  %v1456_v17 = vld [vmem:[%s1398_s4 + $0x10] sm:$0xff]  ;;  %v1459_v18 = vld [vmem:[%s1398_s4 + $0x18] sm:$0xff]  ;;  %v245_v20 = vadd.f32 %v1453_v16, %v1450_v15  ;;  %v1478_v25 = vld [vmem:[%s1398_s4 + $0x68] sm:$0xff]  ;;  %v1485_v30 = vadd.s32 24, %v1409_v1 }
  0x35   : > { %237 = vadd.xlane.f32.xlu0 %v236_v11  ;;  %v239_v21 = vadd.f32 %v1459_v18, %v1456_v17  ;;  %v1469_v22 = vld [vmem:[%s1398_s4 + $0x70] sm:$0xff]  ;;  %v1472_v23 = vld [vmem:[%s1398_s4 + $0x78] sm:$0xff]  ;;  %v254_v27 = vadd.f32 %v1478_v25, %v1475_v24  ;;  %v268_v28 = vld [vmem:[#allocation5] sm:$0xf]  ;;  %v1490_v31 = vadd.s32 40, %v1409_v1  ;;  %v1494_v33 = vadd.s32 32, %v1409_v1 }
  0x36   : > { %1056 = vset.pattern.permute.xlu0 %v1413_v2  ;;  %1057 = vset.pattern.permute.xlu1 %v1441_v12  ;;  %v257_v26 = vadd.f32 %v1472_v23, %v1469_v22  ;;  %v271_v29 = vperm.slane %v268_v28, 0  ;;  %v320_v32 = vperm.slane %v268_v28, 1  ;;  %v1499_v34 = vadd.s32 56, %v1409_v1  ;;  %s982_s26 = sshll.u32 %s1313_s16, 7  ;;  %s867_s22 = sshll.u32 %s1656_s23, 4  ;;  %s868_s22 = int_to_ptr.vmem [resolvable:$true] %s867_s22 }
  0x37   : > { %v1503_v35 = vadd.s32 48, %v1409_v1  ;;  %v369_v36 = vperm.slane %v268_v28, 2  ;;  %v1513_v37 = vperm.slane %v268_v28, 3  ;;  %vm737_vm8 = vcmask 1042434   ;;  %s866_s29 = scalar_lea.hbm %s1725_s3, %s982_s26  ;;  %s855_s16 = scalar_lea.sflag [#allocation4], %s1392_s27 }
  0x38   : > { %vm739_vm9 = vcmask 1043459   ;;  %vm742_vm10 = vcmask 519168   ;;  %s869_s6 = sshll.u32 %s866_s29, 4  ;;  %s1213_s19 = scalar_lea.hbm %s1725_s3, 256  ;;  %s870_s6 = int_to_ptr.hbm [resolvable:$true] %s869_s6 }
  0x39   : > { %s1207_s7 = sshra.s32 %s870_s6, 4  ;;  %s1208_s7 = int_to_ptr.hbm [resolvable:$true] %s1207_s7 }
  0x3a   : > { %s1209_s9 = scalar_lea.hbm %s1208_s7, 128  ;;  %p1214_p0 = scmp.lt.s32.totalorder %s1208_s7, %s1725_s3 }
  0x3b   : > { %252 = vadd.xlane.f32.xlu2 %v251_v19  ;;  %p1210_p4 = scmp.ne.s32.totalorder %s1208_s7, %s1209_s9  ;;  %p1215_p7 = scmp.lt.s32.totalorder %s1213_s19, %s1209_s9 }
  0x3c   : > { %246 = vadd.xlane.f32.xlu1 %v245_v20 }
  0x3d   : > { %240 = vadd.xlane.f32.xlu0 %v239_v21  ;;  %p1211_p6 = pnand %p1210_p4, %p1344_p11  ;;  %p1216_p5 = por %p1215_p7, %p1214_p0 }
  0x3f   : > { %p1212_p13 = pneg %p1211_p6 }
  0x41   : > { %p1217_p8 = pnand %p1216_p5, %p1212_p13 }
  0x44   : > { %258 = vadd.xlane.f32.xlu1 %v257_v26 }
  0x45   : > { %255 = vadd.xlane.f32.xlu0 %v254_v27 }
  0x53   : > { %276 = vperm.xlu2 %1055, %v271_v29  }
  0x59   : > { %282 = vperm.xlu0 %1056, %v271_v29  }
  0x5b   : > { %1058 = vset.pattern.permute.xlu2 %v1485_v30 }
  0x5d   : > { %288 = vperm.xlu1 %1057, %v271_v29  }
  0x61   : > { %1063 = vset.pattern.permute.xlu0 %v1409_v1 }
  0x63   : > { %294 = vperm.xlu2 %1058, %v271_v29  }
  0x65   : > { %1060 = vset.pattern.permute.xlu1 %v1490_v31 }
  0x69   : > { %325 = vperm.xlu0 %1063, %v320_v32  }
  0x6b   : > { %1059 = vset.pattern.permute.xlu2 %v1494_v33 }
  0x6d   : > { %306 = vperm.xlu1 %1060, %v271_v29  }
  0x71   : > { %1068 = vset.pattern.permute.xlu0 %v1490_v31 }
  0x73   : > { %300 = vperm.xlu2 %1059, %v271_v29  }
  0x75   : > { %1062 = vset.pattern.permute.xlu1 %v1499_v34 }
  0x79   : > { %355 = vperm.xlu0 %1068, %v320_v32  }
  0x7b   : > { %1061 = vset.pattern.permute.xlu2 %v1503_v35 }
  0x7d   : > { %318 = vperm.xlu1 %1062, %v271_v29  }
  0x81   : > { %1073 = vset.pattern.permute.xlu0 %v1441_v12 }
  0x83   : > { %312 = vperm.xlu2 %1061, %v271_v29  }
  0x85   : > { %1065 = vset.pattern.permute.xlu1 %v1441_v12 }
  0x89   : > { %386 = vperm.xlu0 %1073, %v369_v36  }
  0x8b   : > { %1064 = vset.pattern.permute.xlu2 %v1413_v2 }
  0x8d   : > { %337 = vperm.xlu1 %1065, %v320_v32  }
  0x91   : > { %1078 = vset.pattern.permute.xlu0 %v1499_v34 }
  0x93   : > { %331 = vperm.xlu2 %1064, %v320_v32  }
  0x95   : > { %1067 = vset.pattern.permute.xlu1 %v1494_v33 }
  0x99   : > { %416 = vperm.xlu0 %1078, %v369_v36  }
  0x9b   : > { %1066 = vset.pattern.permute.xlu2 %v1485_v30 }
  0x9d   : > { %349 = vperm.xlu1 %1067, %v320_v32  }
  0xa1   : > { %1083 = vset.pattern.permute.xlu0 %v1494_v33 }
  0xa3   : > { %343 = vperm.xlu2 %1066, %v320_v32  }
  0xa5   : > { %1070 = vset.pattern.permute.xlu1 %v1499_v34 }
  0xa6   : > { %v250_v38 = vpop.xlane.xlu2 %249 }
  0xa7   : > { %v244_v51 = vpop.xlane.xlu1 %243  ;;  %v1547_v6 = vmul.f32 0.00390625, %v250_v38 }
  0xa8   : > { %v238_v40 = vpop.xlane.xlu0 %237  ;;  %v262_v29 = vmul.f32 0.00390625, %v244_v51 }
  0xa9   : > { %447 = vperm.xlu0 %1083, %v1513_v37   ;;  %v1520_v41 = vmul.f32 0.00390625, %v238_v40 }
  0xab   : > { %1069 = vset.pattern.permute.xlu2 %v1503_v35 }
  0xad   : > { %367 = vperm.xlu1 %1070, %v320_v32  }
  0xae   : > { %v1518_v39 = vpop.xlane.xlu2 %252 }
  0xaf   : > { %v247_v54 = vpop.xlane.xlu1 %246  ;;  %v1553_v21 = vmul.f32 0.00390625, %v1518_v39 }
  0xb0   : > { %v241_v43 = vpop.xlane.xlu0 %240  ;;  %v263_v19 = vmul.f32 0.00390625, %v247_v54 }
  0xb1   : > { %1088 = vset.pattern.permute.xlu0 %v1269_v46  ;;  %v1526_v47 = vmul.f32 0.00390625, %v241_v43 }
  0xb3   : > { %361 = vperm.xlu2 %1069, %v320_v32  }
  0xb5   : > { %1072 = vset.pattern.permute.xlu1 %v1413_v2 }
  0xb6   : > { %v277_v42 = vpop.permute.xlu2 %276 }
  0xb7   : > { %v499_v44 = vmul.f32 %v277_v42, %v1520_v41  ;;  %v259_v57 = vpop.xlane.xlu1 %258 }
  0xb8   : > { %v256_v45 = vpop.xlane.xlu0 %255 }
  0xb9   : > { %v1531_v53 = vmul.f32 0.00390625, %v256_v45  ;;  %v267_v45 = vmul.f32 0.00390625, %v259_v57 }
  0xbb   : > { %1071 = vset.pattern.permute.xlu2 %v1409_v1 }
  0xbd   : > { %380 = vperm.xlu1 %1072, %v369_v36  }
  0xbe   : > { %v295_v50 = vpop.permute.xlu2 %294 }
  0xbf   : > { %v502_v20 = vmul.f32 %v295_v50, %v263_v19 }
  0xc3   : > { %374 = vperm.xlu2 %1071, %v369_v36  }
  0xc5   : > { %1075 = vset.pattern.permute.xlu1 %v1494_v33 }
  0xcb   : > { %v283_v48 = vpop.permute.xlu0 %282  ;;  %1074 = vset.pattern.permute.xlu2 %v1485_v30 }
  0xcc   : > { %v500_v49 = vmul.f32 %v283_v48, %v1526_v47 }
  0xcd   : > { %398 = vperm.xlu1 %1075, %v369_v36   ;;  %v301_v52 = vpop.permute.xlu2 %300 }
  0xce   : > { %567 = vperm.xlu0 %1088, %v500_v49   ;;  %v503_v43 = vmul.f32 %v301_v52, %v1547_v6 }
  0xcf   : > { %v289_v60 = vpop.permute.xlu1 %288 }
  0xd0   : > { %v501_v32 = vmul.f32 %v289_v60, %v262_v29 }
  0xd3   : > { %392 = vperm.xlu2 %1074, %v369_v36  }
  0xd5   : > { %1077 = vset.pattern.permute.xlu1 %v1503_v35 }
  0xdb   : > { %1076 = vset.pattern.permute.xlu2 %v1490_v31 }
  0xdd   : > { %410 = vperm.xlu1 %1077, %v369_v36   ;;  %v313_v55 = vpop.permute.xlu2 %312 }
  0xde   : > { %v505_v56 = vmul.f32 %v313_v55, %v1531_v53 }
  0xdf   : > { %v307_v61 = vpop.permute.xlu1 %306 }
  0xe0   : > { %582 = vperm.xlu0 %1088, %v505_v56   ;;  %v504_v27 = vmul.f32 %v307_v61, %v1553_v21 }
  0xe3   : > { %404 = vperm.xlu2 %1076, %v369_v36   ;;  %v326_v36 = vpop.permute.xlu0 %325 }
  0xe4   : > { %v507_v40 = vmul.f32 %v326_v36, %v1520_v41 }
  0xe5   : > { %1080 = vset.pattern.permute.xlu1 %v1413_v2 }
  0xeb   : > { %1079 = vset.pattern.permute.xlu2 %v1409_v1  ;;  %v356_v54 = vpop.permute.xlu0 %355 }
  0xec   : > { %v512_v55 = vmul.f32 %v356_v54, %v1553_v21 }
  0xed   : > { %429 = vperm.xlu1 %1080, %v1513_v37   ;;  %v332_v58 = vpop.permute.xlu2 %331 }
  0xee   : > { %v508_v59 = vmul.f32 %v332_v58, %v1526_v47 }
  0xef   : > { %v319_v62 = vpop.permute.xlu1 %318 }
  0xf0   : > { %591 = vperm.xlu0 %1088, %v508_v59   ;;  %v506_v48 = vmul.f32 %v319_v62, %v267_v45 }
  0xf3   : > { %423 = vperm.xlu2 %1079, %v1513_v37  }
  0xf5   : > { %1082 = vset.pattern.permute.xlu1 %v1485_v30 }
  0xfb   : > { %1081 = vset.pattern.permute.xlu2 %v1441_v12  ;;  %v387_v58 = vpop.permute.xlu0 %386 }
  0xfc   : > { %v517_v57 = vmul.f32 %v387_v58, %v262_v29 }
  0xfd   : > { %441 = vperm.xlu1 %1082, %v1513_v37   ;;  %v344_v26 = vpop.permute.xlu2 %343 }
  0xff   : > { %v338_v63 = vpop.permute.xlu1 %337 }
 0x100   : > { %v509_v50 = vmul.f32 %v338_v63, %v262_v29 }
 0x103   : > { %435 = vperm.xlu2 %1081, %v1513_v37  }
 0x105   : > { %1085 = vset.pattern.permute.xlu1 %v1503_v35 }
 0x10b   : > { %1084 = vset.pattern.permute.xlu2 %v1490_v31 }
 0x10d   : > { %459 = vperm.xlu1 %1085, %v1513_v37   ;;  %v362_v38 = vpop.permute.xlu2 %361 }
 0x10f   : > { %v350_v10 = vpop.permute.xlu1 %349 }
 0x110   : > { %v511_v11 = vmul.f32 %v350_v10, %v1547_v6 }
 0x112   : > { %600 = vperm.xlu0 %1088, %v511_v11  }
 0x113   : > { %453 = vperm.xlu2 %1084, %v1513_v37  }
 0x115   : > { %1087 = vset.pattern.permute.xlu1 %v1269_v46 }
 0x116   : > { %564 = vperm.xlu1 %1087, %v499_v44  }
 0x11b   : > { %1086 = vset.pattern.permute.xlu2 %v1499_v34 }
 0x11d   : > { %v375_v44 = vpop.permute.xlu2 %374 }
 0x11e   : > { %573 = vperm.xlu1 %1087, %v502_v20   ;;  %v515_v49 = vmul.f32 %v375_v44, %v1520_v41  ;;  %v513_v20 = vmul.f32 %v362_v38, %v1531_v53 }
 0x11f   : > { %v368_v28 = vpop.permute.xlu1 %367 }
 0x123   : > { %465 = vperm.xlu2 %1086, %v1513_v37   ;;  %v510_v37 = vmul.f32 %v344_v26, %v263_v19 }
 0x126   : > { %579 = vperm.xlu1 %1087, %v504_v27   ;;  %v514_v27 = vmul.f32 %v368_v28, %v267_v45 }
 0x12b   : > { %1089 = vset.pattern.permute.xlu2 %v1269_v46 }
 0x12c   : > { %570 = vperm.xlu2 %1089, %v501_v32  }
 0x12d   : > { %v393_v46 = vpop.permute.xlu2 %392 }
 0x12e   : > { %588 = vperm.xlu1 %1087, %v507_v40   ;;  %v518_v61 = vmul.f32 %v393_v46, %v263_v19 }
 0x12f   : > { %v381_v42 = vpop.permute.xlu1 %380 }
 0x130   : > { %v516_v39 = vmul.f32 %v381_v42, %v1526_v47 }
 0x132   : > { %615 = vperm.xlu0 %1088, %v516_v39  }
 0x134   : > { %576 = vperm.xlu2 %1089, %v503_v43  }
 0x136   : > { %597 = vperm.xlu1 %1087, %v510_v37  }
 0x13c   : > { %585 = vperm.xlu2 %1089, %v506_v48  }
 0x13d   : > { %v405_v51 = vpop.permute.xlu2 %404 }
 0x13e   : > { %612 = vperm.xlu1 %1087, %v515_v49   ;;  %v520_v36 = vmul.f32 %v405_v51, %v1553_v21 }
 0x13f   : > { %v399_v59 = vpop.permute.xlu1 %398 }
 0x140   : > { %v519_v26 = vmul.f32 %v399_v59, %v1547_v6 }
 0x144   : > { %594 = vperm.xlu2 %1089, %v509_v50  }
 0x14c   : > { %603 = vperm.xlu2 %1089, %v512_v55  }
 0x14d   : > { %v424_v52 = vpop.permute.xlu2 %423 }
 0x14e   : > { %v523_v56 = vmul.f32 %v424_v52, %v1520_v41  ;;  %v417_v41 = vpop.permute.xlu0 %416 }
 0x14f   : > { %v411_v60 = vpop.permute.xlu1 %410 }
 0x150   : > { %636 = vperm.xlu1 %1087, %v523_v56   ;;  %v521_v38 = vmul.f32 %v411_v60, %v1531_v53 }
 0x154   : > { %618 = vperm.xlu2 %1089, %v517_v57  }
 0x15c   : > { %621 = vperm.xlu2 %1089, %v518_v61  }
 0x15d   : > { %v436_v62 = vpop.permute.xlu2 %435 }
 0x15e   : > { %v525_v10 = vmul.f32 %v436_v62, %v262_v29  ;;  %v448_v29 = vpop.permute.xlu0 %447 }
 0x15f   : > { %v430_v63 = vpop.permute.xlu1 %429  ;;  %v527_v39 = vmul.f32 %v448_v29, %v1547_v6 }
 0x160   : > { %v524_v11 = vmul.f32 %v430_v63, %v1526_v47  ;;  %642 = vperm.xlu1 %1087, %v525_v10   ;;  %v522_v47 = vmul.f32 %v417_v41, %v267_v45 }
 0x162   : > { %639 = vperm.xlu0 %1088, %v524_v11  }
 0x166   : > { %v568_v6 = vpop.permute.xlu0 %567 }
 0x168   : > { %606 = vperm.xlu1 %1087, %v513_v20  }
 0x16a   : > { %624 = vperm.xlu0 %1088, %v519_v26  }
 0x16d   : > { %v454_v42 = vpop.permute.xlu2 %453 }
 0x16e   : > { %v528_v28 = vmul.f32 %v454_v42, %v1553_v21  ;;  %v1599_v11 = vpop.permute.xlu0 %582 }
 0x16f   : > { %v442_v32 = vpop.permute.xlu1 %441 }
 0x170   : > { %v526_v40 = vmul.f32 %v442_v32, %v263_v19  ;;  %609 = vperm.xlu1 %1087, %v514_v27   ;;  %v1572_v19 = vand.u32 127, %v272_v0 }
 0x172   : > { %627 = vperm.xlu0 %1088, %v520_v36   ;;  %645 = vperm.xlu2 %1089, %v526_v40   ;;  %v1575_v48 = vadd.s32 4294967288, %v1572_v19  ;;  %v1578_v49 = vadd.s32 4294967280, %v1572_v19  ;;  %v1587_v52 = vadd.s32 4294967272, %v1572_v19 }
 0x174   : > { %v663_v50 = vperm.slane %v568_v6, %v1575_v48 }
 0x176   : > { %v592_v41 = vpop.permute.xlu0 %591 }
 0x177   : > { %v691_v6 = vperm.slane %v592_v41, %v1575_v48 }
 0x178   : > { %633 = vperm.xlu1 %1087, %v522_v47  }
 0x17a   : > { %630 = vperm.xlu0 %1088, %v521_v38   ;;  %648 = vperm.xlu2 %1089, %v527_v39  }
 0x17d   : > { %v466_v43 = vpop.permute.xlu2 %465 }
 0x17e   : > { %v530_v51 = vmul.f32 %v466_v43, %v267_v45  ;;  %v1590_v45 = vadd.s32 4294967264, %v1572_v19 }
 0x17f   : > { %v460_v37 = vpop.permute.xlu1 %459 }
 0x180   : > { %v529_v44 = vmul.f32 %v460_v37, %v1531_v53 }
 0x182   : > { %654 = vperm.xlu0 %1088, %v529_v44   ;;  %651 = vperm.xlu2 %1089, %v528_v28  }
 0x184   : > { %v601_v36 = vpop.permute.xlu0 %600 }
 0x186   : > { %v571_v46 = vpop.permute.xlu2 %570 }
 0x187   : > { %v667_v54 = vperm.slane %v571_v46, %v1578_v49  ;;  %v678_v46 = vadd.s32 4294967256, %v1572_v19 }
 0x188   : > { %v565_v21 = vpop.permute.xlu1 %564 }
 0x189   : > { %v661_v53 = vperm.slane %v565_v21, %v1572_v19 }
 0x18a   : > { %657 = vperm.xlu2 %1089, %v530_v51   ;;  %1090 = vset.pattern.permute.xlu0 %v1409_v1 }
 0x18b   : > { %v665_v0 = vsel %vm664_vm0, %v663_v50, %v661_v53 }
 0x18c   : > { %v669_v55 = vsel %vm668_vm1, %v667_v54, %v665_v0 }
 0x18e   : > { %v577_v56 = vpop.permute.xlu2 %576 }
 0x18f   : > { %v675_v57 = vperm.slane %v577_v56, %v1590_v45 }
 0x190   : > { %v574_v58 = vpop.permute.xlu1 %573 }
 0x191   : > { %v671_v59 = vperm.slane %v574_v58, %v1587_v52  ;;  %v682_v58 = vadd.s32 4294967248, %v1572_v19 }
 0x192   : > { %1091 = vset.pattern.permute.xlu2 %v1413_v2 }
 0x193   : > { %v673_v1 = vsel %vm672_vm2, %v671_v59, %v669_v55 }
 0x194   : > { %v677_v60 = vsel %vm676_vm3, %v675_v57, %v673_v1 }
 0x196   : > { %v1597_v62 = vpop.permute.xlu2 %585 }
 0x198   : > { %v580_v61 = vpop.permute.xlu1 %579 }
 0x199   : > { %v679_v59 = vperm.slane %v580_v61, %v678_v46  ;;  %v697_v61 = vperm.slane %v601_v36, %v1590_v45 }
 0x19e   : > { %v595_v63 = vpop.permute.xlu2 %594 }
 0x19f   : > { %v693_v0 = vperm.slane %v595_v63, %v1578_v49 }
 0x1a0   : > { %v589_v10 = vpop.permute.xlu1 %588 }
 0x1a1   : > { %v690_v28 = vperm.slane %v589_v10, %v1572_v19 }
 0x1a3   : > { %v692_v21 = vsel %vm664_vm0, %v691_v6, %v690_v28  ;;  %v681_v6 = vsel %vm680_vm4, %v679_v59, %v677_v60 }
 0x1a4   : > { %v616_v29 = vpop.permute.xlu0 %615  ;;  %v694_v1 = vsel %vm668_vm1, %v693_v0, %v692_v21 }
 0x1a5   : > { %v706_v55 = vperm.slane %v616_v29, %v1575_v48 }
 0x1a6   : > { %v604_v26 = vpop.permute.xlu2 %603 }
 0x1a8   : > { %v598_v20 = vpop.permute.xlu1 %597 }
 0x1a9   : > { %v695_v53 = vperm.slane %v598_v20, %v1587_v52 }
 0x1ab   : > { %v696_v20 = vsel %vm672_vm2, %v695_v53, %v694_v1 }
 0x1ae   : > { %v619_v32 = vpop.permute.xlu2 %618 }
 0x1b0   : > { %v613_v27 = vpop.permute.xlu1 %612 }
 0x1b1   : > { %v705_v51 = vperm.slane %v613_v27, %v1572_v19  ;;  %v708_v27 = vperm.slane %v619_v32, %v1578_v49  ;;  %v698_v32 = vsel %vm676_vm3, %v697_v61, %v696_v20 }
 0x1b3   : > { %v707_v10 = vsel %vm664_vm0, %v706_v55, %v705_v51 }
 0x1b6   : > { %v622_v2 = vpop.permute.xlu2 %621 }
 0x1b7   : > { %v710_v41 = vperm.slane %v622_v2, %v1587_v52  ;;  %v709_v2 = vsel %vm668_vm1, %v708_v27, %v707_v10 }
 0x1b9   : > { %v711_v21 = vsel %vm672_vm2, %v710_v41, %v709_v2 }
 0x1c2   : > { %v637_v40 = vpop.permute.xlu1 %636 }
 0x1c3   : > { %v720_v57 = vperm.slane %v637_v40, %v1572_v19  ;;  %v686_v40 = vadd.s32 4294967240, %v1572_v19 }
 0x1cc   : > { %v646_v39 = vpop.permute.xlu2 %645 }
 0x1cd   : > { %v725_v36 = vperm.slane %v646_v39, %v1587_v52 }
 0x1d2   : > { %v643_v42 = vpop.permute.xlu1 %642 }
 0x1d4   : > { %v640_v47 = vpop.permute.xlu0 %639  ;;  %v649_v37 = vpop.permute.xlu2 %648 }
 0x1d5   : > { %v721_v54 = vperm.slane %v640_v47, %v1575_v48  ;;  %v723_v47 = vperm.slane %v643_v42, %v1578_v49  ;;  %v727_v52 = vperm.slane %v649_v37, %v1590_v45 }
 0x1d7   : > { %v722_v63 = vsel %vm664_vm0, %v721_v54, %v720_v57  ;;  %v699_v54 = vperm.slane %v604_v26, %v678_v46 }
 0x1d9   : > { %v700_v0 = vsel %vm680_vm4, %v699_v54, %v698_v32 }
 0x1da   : > { %v607_v38 = vpop.permute.xlu1 %606 }
 0x1db   : > { %v701_v53 = vperm.slane %v607_v38, %v682_v58 }
 0x1dc   : > { %v625_v43 = vpop.permute.xlu0 %624  ;;  %v652_v56 = vpop.permute.xlu2 %651 }
 0x1dd   : > { %v712_v48 = vperm.slane %v625_v43, %v1590_v45  ;;  %v724_v43 = vsel %vm668_vm1, %v723_v47, %v722_v63  ;;  %v729_v59 = vperm.slane %v652_v56, %v678_v46  ;;  %v702_v39 = vsel %vm684_vm5, %v701_v53, %v700_v0 }
 0x1de   : > { %v726_v55 = vsel %vm672_vm2, %v725_v36, %v724_v43 }
 0x1df   : > { %v713_v19 = vsel %vm676_vm3, %v712_v48, %v711_v21  ;;  %v728_v41 = vsel %vm676_vm3, %v727_v52, %v726_v55 }
 0x1e0   : > { %v730_v56 = vsel %vm680_vm4, %v729_v59, %v728_v41 }
 0x1e2   : > { %v610_v50 = vpop.permute.xlu1 %609 }
 0x1e3   : > { %v703_v49 = vperm.slane %v610_v50, %v686_v40 }
 0x1e4   : > { %v628_v44 = vpop.permute.xlu0 %627  ;;  %v658_v38 = vpop.permute.xlu2 %657 }
 0x1e5   : > { %v714_v28 = vperm.slane %v628_v44, %v678_v46  ;;  %v683_v44 = vperm.slane %v1599_v11, %v682_v58  ;;  %v687_v11 = vperm.slane %v1597_v62, %v686_v40  ;;  %v704_v1 = vsel %vm688_vm6, %v703_v49, %v702_v39 }
 0x1e6   : > { %v733_v27 = vperm.slane %v658_v38, %v686_v40 }
 0x1e7   : > { %v715_v60 = vsel %vm680_vm4, %v714_v28, %v713_v19  ;;  %v685_v26 = vsel %vm684_vm5, %v683_v44, %v681_v6 }
 0x1e8   : > { %v689_v45 = vsel %vm688_vm6, %v687_v11, %v685_v26 }
 0x1e9   : > { %v736_v63 = vsel %vm735_vm7, %v704_v1, %v689_v45 }
 0x1ea   : > { %v634_v42 = vpop.permute.xlu1 %633 }
 0x1eb   : > { %v718_v50 = vperm.slane %v634_v42, %v686_v40 }
 0x1ec   : > { %v631_v29 = vpop.permute.xlu0 %630 }
 0x1ed   : > { %v716_v51 = vperm.slane %v631_v29, %v682_v58 }
 0x1ef   : > { %v717_v57 = vsel %vm684_vm5, %v716_v51, %v715_v60 }
 0x1f0   : > { %v719_v46 = vsel %vm688_vm6, %v718_v50, %v717_v57 }
 0x1f1   : > { %v738_v48 = vsel %vm737_vm8, %v719_v46, %v736_v63 }
 0x1f4   : > { %v655_v10 = vpop.permute.xlu0 %654 }
 0x1f5   : > { %v731_v20 = vperm.slane %v655_v10, %v682_v58  ;;  %v269_v58 = vld [vmem:[#allocation7] sm:$0xf] }
 0x1f7   : > { %v732_v37 = vsel %vm684_vm5, %v731_v20, %v730_v56 }
 0x1f8   : > { %v734_v62 = vsel %vm688_vm6, %v733_v27, %v732_v37 }
 0x1f9   : > { %v740_v29 = vsel %vm739_vm9, %v734_v62, %v738_v48 }
 0x1fa   : > { %v743_v61 = vsel %vm742_vm10, %v740_v29, 0.0 }
 0x1fb   : > { %744 = vadd.xlane.f32.xlu1 %v743_v61 }
 0x26e   : > { %v745_v47 = vpop.xlane.xlu1 %744 }
 0x26f   : > { %v746_v28 = vmax.f32 %v745_v47, 0.0 }
 0x271   : > { %v747_v6 = vmul.f32 %v746_v28, %v269_v58 }
 0x273   : > { %v748_v2 = vsel %vm742_vm10, %v747_v6, 0.0 }
 0x274   : > { %v749_v51 = vrot.slane %v748_v2, 4 }
 0x276   : > { %v750_v40 = vadd.f32 %v749_v51, %v748_v2 }
 0x278   : > { %v751_v32 = vrot.slane %v750_v40, 2 }
 0x27a   : > { %v752_v21 = vadd.f32 %v751_v32, %v750_v40 }
 0x27c   : > { %v753_v43 = vrot.slane %v752_v21, 1 }
 0x27e   : > { %v754_v53 = vadd.f32 %v753_v43, %v752_v21 }
 0x280   : > { %v975_v54 = vmul.f32 -1.442695, %v754_v53 }
 0x282   : > { %1099 = vpow2.f32 %v975_v54 }
 0x288   : > { %v1100_v36 = vpop.eup %1099 }
 0x289   : > { %v758_v19 = vadd.f32 1.0, %v1100_v36 }
 0x28b   : > { %1101 = vrcp.f32 %v758_v19  ;;  %v770_v60 = vand.u32 2147483648, %v758_v19  ;;  %v768_v55 = vand.u32 2147483647, %v758_v19  ;;  %vm764_vm12 = vweird.f32 %v758_v19 }
 0x28d   : > { %v771_v57 = vor.u32 1.1754944e-38, %v770_v60  ;;  %vm769_vm14 = vcmp.eq.f32.partialorder %v768_v55, 8.507059e+37 }
 0x291   : > { %v1102_v49 = vpop.eup %1101 }
 0x292   : > { %v760_v42 = vmul.f32 %v1102_v49, %v758_v19  ;;  %vm765_vm11 = vweird.f32 %v1102_v49 }
 0x293   : > { %vm766_vm13 = vmor %vm764_vm12, %vm765_vm11 }
 0x294   : > { %v761_v44 = vsub.f32 1.0, %v760_v42 }
 0x296   : > { %v762_v0 = vmul.f32 %v1102_v49, %v761_v44 }
 0x298   : > { %v763_v59 = vadd.f32 %v1102_v49, %v762_v0 }
 0x29a   : > { %v767_v26 = vsel %vm766_vm13, %v1102_v49, %v763_v59 }
 0x29b   : > { %v772_v52 = vsel %vm769_vm14, %v771_v57, %v767_v26 }
 0x29c   : > { %784 = vperm.xlu2 %1091, %v772_v52   ;;  %778 = vperm.xlu0 %1090, %v772_v52  }
 0x2a4   : > { %1092 = vset.pattern.permute.xlu2 %v1441_v12  ;;  %1093 = vset.pattern.permute.xlu0 %v1485_v30 }
 0x2ac   : > { %790 = vperm.xlu2 %1092, %v772_v52   ;;  %796 = vperm.xlu0 %1093, %v772_v52  }
 0x2b4   : > { %1094 = vset.pattern.permute.xlu2 %v1494_v33  ;;  %1096 = vset.pattern.permute.xlu0 %v1503_v35 }
 0x2bc   : > { %802 = vperm.xlu2 %1094, %v772_v52   ;;  %814 = vperm.xlu0 %1096, %v772_v52  }
 0x2c4   : > { %1095 = vset.pattern.permute.xlu2 %v1490_v31  ;;  %1098 = vset.pattern.permute.xlu0 %v1499_v34 }
 0x2cc   : > { %808 = vperm.xlu2 %1095, %v772_v52  }
 0x2d4   : > { %1097 = vset.pattern.permute.xlu2 %v1499_v34 }
 0x2dc   : > { %820 = vperm.xlu2 %1097, %v772_v52  }
 0x2f6   : > { %v785_v12 = vpop.permute.xlu2 %784 }
 0x2f7   : > { %v824_v39 = vmul.f32 %v785_v12, %v1456_v17  ;;  %v825_v30 = vmul.f32 %v785_v12, %v1459_v18 }
 0x2f9   : > { %840 = vst [vmem:[%s1656_s23 + $0x10] sm:$0xff] %v824_v39 }
 0x2fa   : > { %841 = vst [vmem:[%s1656_s23 + $0x18] sm:$0xff] %v825_v30 }
 0x306   : > { %v791_v31 = vpop.permute.xlu2 %790 }
 0x307   : > { %v826_v33 = vmul.f32 %v791_v31, %v1423_v5  ;;  %v827_v17 = vmul.f32 %v791_v31, %v1428_v7 }
 0x309   : > { %842 = vst [vmem:[%s1656_s23 + $0x20] sm:$0xff] %v826_v33 }
 0x30a   : > { %843 = vst [vmem:[%s1656_s23 + $0x28] sm:$0xff] %v827_v17 }
 0x30e   : > { %v779_v18 = vpop.permute.xlu0 %778 }
 0x30f   : > { %v822_v34 = vmul.f32 %v779_v18, %v1431_v8  ;;  %v823_v35 = vmul.f32 %v779_v18, %v1434_v9 }
 0x311   : > { %838 = vst [vmem:[%s1656_s23] sm:$0xff] %v822_v34 }
 0x312   : > { %839 = vst [vmem:[%s1656_s23 + $0x8] sm:$0xff] %v823_v35 }
 0x316   : > { %v803_v38 = vpop.permute.xlu2 %802 }
 0x317   : > { %v830_v50 = vmul.f32 %v803_v38, %v1417_v3  ;;  %v831_v5 = vmul.f32 %v803_v38, %v1420_v4 }
 0x319   : > { %846 = vst [vmem:[%s1656_s23 + $0x40] sm:$0xff] %v830_v50 }
 0x31a   : > { %847 = vst [vmem:[%s1656_s23 + $0x48] sm:$0xff] %v831_v5 }
 0x31e   : > { %v797_v7 = vpop.permute.xlu0 %796 }
 0x31f   : > { %v828_v11 = vmul.f32 %v797_v7, %v1450_v15  ;;  %v829_v8 = vmul.f32 %v797_v7, %v1453_v16 }
 0x321   : > { %844 = vst [vmem:[%s1656_s23 + $0x30] sm:$0xff] %v828_v11 }
 0x322   : > { %845 = vst [vmem:[%s1656_s23 + $0x38] sm:$0xff] %v829_v8 }
 0x326   : > { %v809_v9 = vpop.permute.xlu2 %808 }
 0x327   : > { %v832_v1 = vmul.f32 %v809_v9, %v1444_v13  ;;  %v833_v10 = vmul.f32 %v809_v9, %v1447_v14 }
 0x329   : > { %848 = vst [vmem:[%s1656_s23 + $0x50] sm:$0xff] %v832_v1 }
 0x32a   : > { %849 = vst [vmem:[%s1656_s23 + $0x58] sm:$0xff] %v833_v10 }
 0x32e   : > { %v815_v3 = vpop.permute.xlu0 %814 }
 0x32f   : > { %v834_v4 = vmul.f32 %v815_v3, %v1475_v24  ;;  %v835_v15 = vmul.f32 %v815_v3, %v1478_v25 }
 0x331   : > { %850 = vst [vmem:[%s1656_s23 + $0x60] sm:$0xff] %v834_v4 }
 0x332   : > { %851 = vst [vmem:[%s1656_s23 + $0x68] sm:$0xff] %v835_v15 }
 0x336   : > { %v821_v13 = vpop.permute.xlu2 %820 }
 0x337   : > { %v836_v14 = vmul.f32 %v821_v13, %v1469_v22  ;;  %v837_v16 = vmul.f32 %v821_v13, %v1472_v23 }
 0x339   : > { %852 = vst [vmem:[%s1656_s23 + $0x70] sm:$0xff] %v836_v14 }
 0x33a   : > { %853 = vst [vmem:[%s1656_s23 + $0x78] sm:$0xff] %v837_v16 }
 0x33b   : > { %1220 = shalt.err (!%p1217_p8)
}
 0x33c   : > { %s1270_s27 = smov 256   ;;  %s1271_s28 = smov 16  }
 0x33d   : > { %993 = dma.vmem_to_hbm [thread:$0]  (%p1344_p11), %s868_s22, 2048, %s870_s6, %s855_s16, %s1270_s27, %s1270_s27, %s1271_s28  }
 0x33e PF: > { %s884_s30 = sand.u32 1, %s1251_s12   ;;  %p1732_p9 = scmp.ge.s32.totalorder %s1263_s15, 2 }
 0x33f   : > { %s885_s4 = scalar_lea.sflag [#allocation4], %s884_s30 }
 0x340   : > { %p1007_p10 = pnand %p1732_p9, %p1348_p12 }
 0x342   : > { %p1008_p1 = pneg %p1007_p10 }
 0x344   : > { %1246 = dma.done.wait (%p1008_p1), %s885_s4, 2048  }
 0x345   : > { %1248 = vsyncadd (%p1008_p1), %s885_s4, 4294965248  ;;  %p17_p2 = scmp.ge.s32.totalorder %s1317_s18, 4   ;;  %s1733_s12 = smov %s1255_s13 }
 0x346   : > { %s1734_s13 = smov %s1259_s14  ;;  %s1735_s14 = smov %s1329_s21 }
 0x347   : > { %s1736_s15 = smov %s1317_s18  ;;  %19 = sbr.rel (!%p17_p2) target bundleno = 6 (0x6), region = 85 }
 0x34c   :  { %891 = vsyncpa [#allocation3], 1 }
 0x34d   :  { %893 = vsyncpa [#allocation3 + $0x1], 1 }
 0x34e   :  { %894 = vsyncpa [#allocation6], 1 }
 0x34f   :  { %895 = vsyncpa [#allocation4], 1 }
 0x350   :  { %897 = vsyncpa [#allocation4 + $0x1], 1 }

</bundles_post_ra>
